<compile_context>
chip_gen: v5e
topology: v5e:2x2
jax: 0.10.0
libtpu: 0.0.40
codegen_flags: <defaults>
</compile_context>

<pallas_src>
import math

import jax
import jax.numpy as jnp
from jax.experimental import pallas as pl
from jax.experimental.pallas import tpu as pltpu


_VMEM_LIMIT_BYTES = 32 * 1024 * 1024
_VMEM_BUDGET_BYTES = 24 * 1024 * 1024   # headroom under the requested limit


def _time_decimation_kernel(x_ref, a_ref, o_ref):
    # x_ref: (row_tile, T)  a_ref: (T, T_out) bin-average matrix (entries 1/factor)
    # o_ref: (row_tile, T_out)
    o_ref[...] = jnp.dot(
        x_ref[...], a_ref[...], preferred_element_type=jnp.float32
    ).astype(o_ref.dtype)


def _pick_row_tile(num_rows, t_in, t_out, itemsize):
    """Largest row tile (multiple of 8) whose double-buffered input + output
    blocks plus the resident bin matrix fit in the VMEM budget."""
    a_bytes = t_in * t_out * itemsize
    per_row = 2 * (t_in + t_out) * itemsize       # in + out, both double-buffered
    rows = (_VMEM_BUDGET_BYTES - a_bytes) // max(1, per_row)
    rows = int(max(8, rows))
    if rows >= num_rows:
        return num_rows                           # full extent is always tile-legal
    return max(8, (rows // 8) * 8)                # keep sublane dim a multiple of 8


def abstract_time_decimation(x, factor, count_log=False, *, row_tile=None):
    """Pallas equivalent of AbstractTimeDecimation.forward for NCT / NCHWT inputs."""
    if factor <= 0:
        raise AssertionError(
            f"Expected factor to be a positive integer. Found factor={factor!r}."
        )
    if factor & (factor - 1) != 0:
        raise AssertionError(
            f"Expected factor to be a power of 2. Found factor={factor!r}."
        )
    factor = int(factor)

    if factor == 1:
        # Decimation by 1 is the identity; no HBM traffic needed.
        return (x, None) if count_log else x

    lead = x.shape[:-1]
    T = x.shape[-1]
    T_out = -(-T // factor)                       # ceil(T / factor)
    R = math.prod(lead) if lead else 1

    # Free, contiguous reshape to a lane-dense 2-D slab.
    x2 = jnp.reshape(x, (R, T))

    # Bin-averaging matrix with the 1/factor scaling folded in (exact, factor is
    # a power of 2).  Missing (padded) time steps simply have no row in A, which
    # is identical to zero padding then averaging over `factor`.
    a = (
        (jnp.arange(T)[:, None] // factor) == jnp.arange(T_out)[None, :]
    ).astype(x.dtype) * (1.0 / factor)

    itemsize = jnp.dtype(x.dtype).itemsize
    if row_tile is None:
        row_tile = _pick_row_tile(R, T, T_out, itemsize)
    else:
        row_tile = min(int(row_tile), R)
        if row_tile < R:
            row_tile = max(8, (row_tile // 8) * 8)
    grid_r = pl.cdiv(R, row_tile)

    out2 = pl.pallas_call(
        _time_decimation_kernel,
        out_shape=jax.ShapeDtypeStruct((R, T_out), x.dtype),
        grid=(grid_r,),
        in_specs=[
            pl.BlockSpec((row_tile, T), lambda i: (i, 0)),
            pl.BlockSpec((T, T_out), lambda i: (0, 0)),   # resident bin matrix
        ],
        out_specs=pl.BlockSpec((row_tile, T_out), lambda i: (i, 0)),
        compiler_params=pltpu.CompilerParams(
            dimension_semantics=("parallel",),
            vmem_limit_bytes=_VMEM_LIMIT_BYTES,
        ),
    )(x2, a)

    out = jnp.reshape(out2, lead + (T_out,))
    # TODO(synk): the lava-dl block returns (x, None) for count_log=True; if a
    # future version returns an event-count tensor, compute it here instead.
    return (out, None) if count_log else out


def _reference(x, factor):
    """Pure-JAX reference reproducing the torch module (pad -> reshape -> mean)."""
    T = x.shape[-1]
    pad_len = (-T) % factor
    xp = jnp.pad(
        x.astype(jnp.float32), [(0, 0)] * (x.ndim - 1) + [(0, pad_len)]
    )
    T_out = xp.shape[-1] // factor
    return jnp.mean(jnp.reshape(xp, xp.shape[:-1] + (T_out, factor)), axis=-1)


if __name__ == "__main__":
    key = jax.random.PRNGKey(0)
    k1, k2, k3, k4 = jax.random.split(key, 4)

    # Quantize f32 test inputs to the bf16 grid (kept in f32) so that bin sums
    # are exact in the MXU's f32 accumulator regardless of the f32-matmul pass
    # mode -> the comparison below validates the decimation logic exactly.
    def q(v):
        return v.astype(jnp.bfloat16).astype(jnp.float32)

    # 1) NCHWT input, factor=4, T divisible by factor (no padding).
    x1 = q(jax.random.normal(k1, (2, 4, 4, 4, 256), jnp.float32))
    out1 = jax.block_until_ready(abstract_time_decimation(x1, factor=4))
    assert out1.shape == (2, 4, 4, 4, 64), out1.shape
    assert out1.dtype == x1.dtype
    assert jnp.allclose(out1, _reference(x1, 4), rtol=1e-5, atol=1e-5)

    # 2) NCT input, factor=8, T=250 (ragged last bin -> zero-pad semantics),
    #    plus the count_log=True return path.
    x2 = q(jax.random.normal(k2, (2, 32, 250), jnp.float32))
    out2, cnt = abstract_time_decimation(x2, factor=8, count_log=True)
    out2 = jax.block_until_ready(out2)
    assert cnt is None
    assert out2.shape == (2, 32, 32), out2.shape
    assert jnp.allclose(out2, _reference(x2, 8), rtol=1e-5, atol=1e-5)

    # 3) Force a multi-step row grid with a ragged (masked) edge tile.
    x3 = q(jax.random.normal(k3, (3, 11, 8, 8, 128), jnp.float32))   # R = 2112
    out3 = jax.block_until_ready(
        abstract_time_decimation(x3, factor=2, row_tile=256))        # grid = 9
    assert out3.shape == (3, 11, 8, 8, 64), out3.shape
    assert jnp.allclose(out3, _reference(x3, 2), rtol=1e-5, atol=1e-5)

    # 4) Native bf16 input (MXU-native dtype path).
    x4 = jax.random.normal(k4, (2, 8, 16, 16, 64), jnp.float32).astype(jnp.bfloat16)
    out4 = jax.block_until_ready(abstract_time_decimation(x4, factor=2))
    assert out4.shape == (2, 8, 16, 16, 32), out4.shape
    assert out4.dtype == jnp.bfloat16
    assert jnp.allclose(out4.astype(jnp.float32), _reference(x4, 2),
                        rtol=1e-2, atol=1e-2)

    # 5) factor=1 identity fast path.
    out5 = jax.block_until_ready(abstract_time_decimation(x2, factor=1))
    assert jnp.array_equal(out5, x2)

    print("KERNEL_OK")
</pallas_src>

<mosaic_0001>
module attributes {stable_mosaic.version = 11 : i64} {
  func.func @_time_decimation_kernel(%arg0: i32, %arg1: memref<128x256xf32, #tpu.memory_space<vmem>>, %arg2: memref<256x64xf32, #tpu.memory_space<vmem>>, %arg3: memref<128x64xf32, #tpu.memory_space<vmem>>) attributes {dimension_semantics = [#tpu.dimension_semantics<parallel>], iteration_bounds = array<i64: 1>, scalar_prefetch = 0 : i64, scratch_operands = 0 : i64, tpu.core_type = #tpu.core_type<tc>, window_params = [{transform_indices = @transform_0, window_bounds = array<i64: 128, 256>}, {pipeline_mode = #tpu.pipeline_mode<synchronous>, transform_indices = @transform_1, window_bounds = array<i64: 256, 64>}, {transform_indices = @transform_2, window_bounds = array<i64: 128, 64>}]} {
    %c0 = arith.constant 0 : index
    %c0_0 = arith.constant 0 : index
    %0 = vector.load %arg1[%c0, %c0_0] : memref<128x256xf32, #tpu.memory_space<vmem>>, vector<128x256xf32>
    %c0_1 = arith.constant 0 : index
    %c0_2 = arith.constant 0 : index
    %1 = vector.load %arg2[%c0_1, %c0_2] : memref<256x64xf32, #tpu.memory_space<vmem>>, vector<256x64xf32>
    %cst = arith.constant dense<0.000000e+00> : vector<128x64xf32>
    %2 = tpu.matmul %0, %1, %cst {dimension_numbers = #tpu.dot_dimension_numbers<[1], [0], [0], [1], [0, 0, 1, 1], [], []>} : vector<128x256xf32>, vector<256x64xf32>, vector<128x64xf32> -> vector<128x64xf32>
    %c0_3 = arith.constant 0 : index
    %c0_4 = arith.constant 0 : index
    %3 = vector.load %arg3[%c0_3, %c0_4] : memref<128x64xf32, #tpu.memory_space<vmem>>, vector<128x64xf32>
    tpu.vector_store %arg3[%c0_3, %c0_4], %2 {strides = array<i32>} : memref<128x64xf32, #tpu.memory_space<vmem>>, vector<128x64xf32>,
    return
  }
  func.func @transform_0(%arg0: i32) -> (i32, i32) {
    %c0_i32 = arith.constant 0 : i32
    %c0_i32_0 = arith.constant 0 : i32
    return %arg0, %c0_i32 : i32, i32
  }
  func.func @transform_1(%arg0: i32) -> (i32, i32) {
    %c0_i32 = arith.constant 0 : i32
    %c0_i32_0 = arith.constant 0 : i32
    %c0_i32_1 = arith.constant 0 : i32
    return %c0_i32, %c0_i32_0 : i32, i32
  }
  func.func @transform_2(%arg0: i32) -> (i32, i32) {
    %c0_i32 = arith.constant 0 : i32
    %c0_i32_0 = arith.constant 0 : i32
    return %arg0, %c0_i32 : i32, i32
  }
}

</mosaic_0001>

<bundles_post_ra>
// kernel: tpu_custom_call.1
= control target key start
LH: loop header
LB: loop body
LE: loop exit
PB: predicated region body
PF: predicated region fallthrough
CT: control target
= control target key end

     0   :  { %vm205_vm0 = vcmask 523264   ;;  %s529_s1 = inlined_call_operand.vmem [shape: f32[256,64], index: 1, kind: input, shape index: {}]   ;;  %s530_s0 = inlined_call_operand.vmem [shape: f32[128,256], index: 0, kind: input, shape index: {}]   ;;  %s531_s2 = inlined_call_operand.vmem [shape: f32[128,64], index: 2, kind: output, shape index: {}]  }
   0x1   :  { %v58_v0 = vld [vmem:[%s529_s1 + $0x78] sm:$0xff]  ;;  %v57_v2 = vld [vmem:[%s529_s1 + $0x70] sm:$0xff]  ;;  %v56_v4 = vld [vmem:[%s529_s1 + $0x68] sm:$0xff] }
   0x2   :  { %v74_v1 = vld [vmem:[%s529_s1 + $0xf8] sm:$0xff]  ;;  %226 = vmatpush.msra.mxu2 %v58_v0  ;;  %v73_v3 = vld [vmem:[%s529_s1 + $0xf0] sm:$0xff]  ;;  %v72_v5 = vld [vmem:[%s529_s1 + $0xe8] sm:$0xff]  ;;  %75 = vmatpush.msra.mxu0 %v58_v0 }
   0x3   :  { %242 = vmatpush.msra.mxu3 %v74_v1  ;;  %140 = vmatpush.msra.mxu1 %v74_v1  ;;  %v55_v6 = vld [vmem:[%s529_s1 + $0x60] sm:$0xff]  ;;  %v54_v8 = vld [vmem:[%s529_s1 + $0x58] sm:$0xff]  ;;  %v53_v10 = vld [vmem:[%s529_s1 + $0x50] sm:$0xff] }
   0x4   :  { %227 = vmatpush.msra.mxu2 %v57_v2  ;;  %v71_v7 = vld [vmem:[%s529_s1 + $0xe0] sm:$0xff]  ;;  %76 = vmatpush.msra.mxu0 %v57_v2  ;;  %v70_v9 = vld [vmem:[%s529_s1 + $0xd8] sm:$0xff]  ;;  %v69_v11 = vld [vmem:[%s529_s1 + $0xd0] sm:$0xff] }
   0x5   :  { %243 = vmatpush.msra.mxu3 %v73_v3  ;;  %141 = vmatpush.msra.mxu1 %v73_v3  ;;  %v52_v12 = vld [vmem:[%s529_s1 + $0x48] sm:$0xff]  ;;  %v51_v14 = vld [vmem:[%s529_s1 + $0x40] sm:$0xff]  ;;  %v50_v16 = vld [vmem:[%s529_s1 + $0x38] sm:$0xff] }
   0x6   :  { %228 = vmatpush.msra.mxu2 %v56_v4  ;;  %77 = vmatpush.msra.mxu0 %v56_v4  ;;  %v68_v13 = vld [vmem:[%s529_s1 + $0xc8] sm:$0xff]  ;;  %v67_v15 = vld [vmem:[%s529_s1 + $0xc0] sm:$0xff]  ;;  %v66_v17 = vld [vmem:[%s529_s1 + $0xb8] sm:$0xff] }
   0x7   :  { %244 = vmatpush.msra.mxu3 %v72_v5  ;;  %142 = vmatpush.msra.mxu1 %v72_v5  ;;  %v49_v18 = vld [vmem:[%s529_s1 + $0x30] sm:$0xff]  ;;  %v48_v20 = vld [vmem:[%s529_s1 + $0x28] sm:$0xff]  ;;  %v47_v22 = vld [vmem:[%s529_s1 + $0x20] sm:$0xff] }
   0x8   :  { %229 = vmatpush.msra.mxu2 %v55_v6  ;;  %78 = vmatpush.msra.mxu0 %v55_v6  ;;  %v65_v19 = vld [vmem:[%s529_s1 + $0xb0] sm:$0xff]  ;;  %v64_v21 = vld [vmem:[%s529_s1 + $0xa8] sm:$0xff]  ;;  %v63_v23 = vld [vmem:[%s529_s1 + $0xa0] sm:$0xff] }
   0x9   :  { %245 = vmatpush.msra.mxu3 %v71_v7  ;;  %143 = vmatpush.msra.mxu1 %v71_v7  ;;  %v46_v24 = vld [vmem:[%s529_s1 + $0x18] sm:$0xff]  ;;  %v45_v26 = vld [vmem:[%s529_s1 + $0x10] sm:$0xff]  ;;  %v44_v28 = vld [vmem:[%s529_s1 + $0x8] sm:$0xff] }
   0xa   :  { %230 = vmatpush.msra.mxu2 %v54_v8  ;;  %79 = vmatpush.msra.mxu0 %v54_v8  ;;  %v62_v25 = vld [vmem:[%s529_s1 + $0x98] sm:$0xff]  ;;  %v61_v27 = vld [vmem:[%s529_s1 + $0x90] sm:$0xff]  ;;  %v60_v29 = vld [vmem:[%s529_s1 + $0x88] sm:$0xff] }
   0xb   :  { %246 = vmatpush.msra.mxu3 %v70_v9  ;;  %144 = vmatpush.msra.mxu1 %v70_v9  ;;  %v43_v30 = vld [vmem:[%s529_s1] sm:$0xff]  ;;  %v28_v33 = vld [vmem:[%s530_s0 + $0x88] sm:$0xff]  ;;  %v29_v36 = vld [vmem:[%s530_s0 + $0x90] sm:$0xff] }
   0xc   :  { %231 = vmatpush.msra.mxu2 %v53_v10  ;;  %80 = vmatpush.msra.mxu0 %v53_v10  ;;  %v59_v31 = vld [vmem:[%s529_s1 + $0x80] sm:$0xff]  ;;  %v12_v35 = vld [vmem:[%s530_s0 + $0x8] sm:$0xff]  ;;  %v30_v37 = vld [vmem:[%s530_s0 + $0x98] sm:$0xff] }
   0xd   :  { %247 = vmatpush.msra.mxu3 %v69_v11  ;;  %145 = vmatpush.msra.mxu1 %v69_v11  ;;  %v27_v32 = vld [vmem:[%s530_s0 + $0x80] sm:$0xff]  ;;  %v13_v38 = vld [vmem:[%s530_s0 + $0x10] sm:$0xff]  ;;  %v14_v39 = vld [vmem:[%s530_s0 + $0x18] sm:$0xff] }
   0xe   :  { %232 = vmatpush.msra.mxu2 %v52_v12  ;;  %81 = vmatpush.msra.mxu0 %v52_v12  ;;  %v11_v34 = vld [vmem:[%s530_s0] sm:$0xff]  ;;  %v32_v41 = vld [vmem:[%s530_s0 + $0xa8] sm:$0xff]  ;;  %v33_v44 = vld [vmem:[%s530_s0 + $0xb0] sm:$0xff] }
   0xf   :  { %248 = vmatpush.msra.mxu3 %v68_v13  ;;  %146 = vmatpush.msra.mxu1 %v68_v13  ;;  %v31_v40 = vld [vmem:[%s530_s0 + $0xa0] sm:$0xff]  ;;  %v16_v43 = vld [vmem:[%s530_s0 + $0x28] sm:$0xff]  ;;  %v34_v45 = vld [vmem:[%s530_s0 + $0xb8] sm:$0xff] }
  0x10   :  { %233 = vmatpush.msra.mxu2 %v51_v14  ;;  %82 = vmatpush.msra.mxu0 %v51_v14  ;;  %v15_v42 = vld [vmem:[%s530_s0 + $0x20] sm:$0xff]  ;;  %v17_v46 = vld [vmem:[%s530_s0 + $0x30] sm:$0xff]  ;;  %v18_v47 = vld [vmem:[%s530_s0 + $0x38] sm:$0xff] }
  0x11   :  { %249 = vmatpush.msra.mxu3 %v67_v15  ;;  %147 = vmatpush.msra.mxu1 %v67_v15  ;;  %v35_v48 = vld [vmem:[%s530_s0 + $0xc0] sm:$0xff]  ;;  %v36_v49 = vld [vmem:[%s530_s0 + $0xc8] sm:$0xff]  ;;  %v37_v52 = vld [vmem:[%s530_s0 + $0xd0] sm:$0xff] }
  0x12   :  { %234 = vmatpush.msra.mxu2 %v50_v16  ;;  %83 = vmatpush.msra.mxu0 %v50_v16  ;;  %v19_v50 = vld [vmem:[%s530_s0 + $0x40] sm:$0xff]  ;;  %v20_v51 = vld [vmem:[%s530_s0 + $0x48] sm:$0xff]  ;;  %v38_v53 = vld [vmem:[%s530_s0 + $0xd8] sm:$0xff] }
  0x13   :  { %250 = vmatpush.msra.mxu3 %v66_v17  ;;  %148 = vmatpush.msra.mxu1 %v66_v17  ;;  %v21_v54 = vld [vmem:[%s530_s0 + $0x50] sm:$0xff]  ;;  %v22_v55 = vld [vmem:[%s530_s0 + $0x58] sm:$0xff]  ;;  %v39_v56 = vld [vmem:[%s530_s0 + $0xe0] sm:$0xff] }
  0x14   :  { %235 = vmatpush.msra.mxu2 %v49_v18  ;;  %84 = vmatpush.msra.mxu0 %v49_v18  ;;  %v40_v57 = vld [vmem:[%s530_s0 + $0xe8] sm:$0xff]  ;;  %v23_v58 = vld [vmem:[%s530_s0 + $0x60] sm:$0xff]  ;;  %v41_v60 = vld [vmem:[%s530_s0 + $0xf0] sm:$0xff] }
  0x15   :  { %251 = vmatpush.msra.mxu3 %v65_v19  ;;  %149 = vmatpush.msra.mxu1 %v65_v19  ;;  %v24_v59 = vld [vmem:[%s530_s0 + $0x68] sm:$0xff]  ;;  %v42_v61 = vld [vmem:[%s530_s0 + $0xf8] sm:$0xff]  ;;  %v25_v62 = vld [vmem:[%s530_s0 + $0x70] sm:$0xff] }
  0x16   :  { %236 = vmatpush.msra.mxu2 %v48_v20  ;;  %85 = vmatpush.msra.mxu0 %v48_v20  ;;  %v26_v63 = vld [vmem:[%s530_s0 + $0x78] sm:$0xff] }
  0x17   :  { %252 = vmatpush.msra.mxu3 %v64_v21  ;;  %150 = vmatpush.msra.mxu1 %v64_v21 }
  0x18   :  { %237 = vmatpush.msra.mxu2 %v47_v22  ;;  %86 = vmatpush.msra.mxu0 %v47_v22 }
  0x19   :  { %253 = vmatpush.msra.mxu3 %v63_v23  ;;  %151 = vmatpush.msra.mxu1 %v63_v23 }
  0x1a   :  { %238 = vmatpush.msra.mxu2 %v46_v24  ;;  %87 = vmatpush.msra.mxu0 %v46_v24 }
  0x1b   :  { %254 = vmatpush.msra.mxu3 %v62_v25  ;;  %152 = vmatpush.msra.mxu1 %v62_v25 }
  0x1c   :  { %239 = vmatpush.msra.mxu2 %v45_v26  ;;  %88 = vmatpush.msra.mxu0 %v45_v26 }
  0x1d   :  { %255 = vmatpush.msra.mxu3 %v61_v27  ;;  %153 = vmatpush.msra.mxu1 %v61_v27 }
  0x1e   :  { %240 = vmatpush.msra.mxu2 %v44_v28  ;;  %89 = vmatpush.msra.mxu0 %v44_v28 }
  0x1f   :  { %256 = vmatpush.msra.mxu3 %v60_v29  ;;  %154 = vmatpush.msra.mxu1 %v60_v29 }
  0x20   :  { %241 = vmatpush.msra.mxu2 %v43_v30  ;;  %90 = vmatpush.msra.mxu0 %v43_v30 }
  0x21   :  { %257 = vmatpush.msra.mxu3 %v59_v31  ;;  %115 = vmatmul.f32.vlgmr.msra.gmra.mxu2 %v27_v32 }
  0x22   :  { %180 = vmatmul.f32.vlgmr.msra.gmra.mxu3 %v28_v33  ;;  %155 = vmatpush.msra.mxu1 %v59_v31 }
  0x23   :  { %91 = vmatmul.f32.vlgmr.msra.gmra.mxu0 %v11_v34  ;;  %156 = vmatmul.f32.vlgmr.msra.gmra.mxu1 %v12_v35 }
  0x29   :  { %118 = vmatmul.f32.gmra.mxu2 %v29_v36 }
  0x2a   :  { %183 = vmatmul.f32.gmra.mxu3 %v30_v37 }
  0x2b   :  { %94 = vmatmul.f32.gmra.mxu0 %v13_v38  ;;  %159 = vmatmul.f32.gmra.mxu1 %v14_v39 }
  0x31   :  { %121 = vmatmul.f32.gmra.mxu2 %v31_v40 }
  0x32   :  { %186 = vmatmul.f32.gmra.mxu3 %v32_v41 }
  0x33   :  { %97 = vmatmul.f32.gmra.mxu0 %v15_v42  ;;  %162 = vmatmul.f32.gmra.mxu1 %v16_v43 }
  0x39   :  { %124 = vmatmul.f32.gmra.mxu2 %v33_v44 }
  0x3a   :  { %189 = vmatmul.f32.gmra.mxu3 %v34_v45 }
  0x3b   :  { %100 = vmatmul.f32.gmra.mxu0 %v17_v46  ;;  %165 = vmatmul.f32.gmra.mxu1 %v18_v47 }
  0x41   :  { %127 = vmatmul.f32.gmra.mxu2 %v35_v48 }
  0x42   :  { %192 = vmatmul.f32.gmra.mxu3 %v36_v49 }
  0x43   :  { %103 = vmatmul.f32.gmra.mxu0 %v19_v50  ;;  %168 = vmatmul.f32.gmra.mxu1 %v20_v51 }
  0x49   :  { %130 = vmatmul.f32.gmra.mxu2 %v37_v52 }
  0x4a   :  { %195 = vmatmul.f32.gmra.mxu3 %v38_v53 }
  0x4b   :  { %106 = vmatmul.f32.gmra.mxu0 %v21_v54  ;;  %171 = vmatmul.f32.gmra.mxu1 %v22_v55 }
  0x51   :  { %133 = vmatmul.f32.gmra.mxu2 %v39_v56 }
  0x52   :  { %198 = vmatmul.f32.gmra.mxu3 %v40_v57 }
  0x53   :  { %109 = vmatmul.f32.gmra.mxu0 %v23_v58  ;;  %174 = vmatmul.f32.gmra.mxu1 %v24_v59 }
  0x59   :  { %136 = vmatmul.f32.gmra.mxu2 %v41_v60 }
  0x5a   :  { %201 = vmatmul.f32.gmra.mxu3 %v42_v61 }
  0x5b   :  { %112 = vmatmul.f32.gmra.mxu0 %v25_v62  ;;  %177 = vmatmul.f32.gmra.mxu1 %v26_v63 }
  0xa0   :  { %v92_v0 = vpop.f32.mrf.mxu0  ;;  %v157_v1 = vpop.f32.mrf.mxu1 }
  0xa1   :  { %v158_v2 = vadd.f32 %v157_v1, %v92_v0 }
  0xa3   :  { %206 = vst.msk [vmem:[%s531_s2] sm:$0xff] %vm205_vm0, %v158_v2 }
  0xa4   :  { %v116_v3 = vpop.f32.mrf.mxu2 }
  0xa5   :  { %v181_v4 = vpop.f32.mrf.mxu3 }
  0xa6   :  { %v182_v5 = vadd.f32 %v181_v4, %v116_v3 }
  0xa8   :  { %214 = vst.msk [vmem:[%s531_s2 + $0x40] sm:$0xff] %vm205_vm0, %v182_v5  ;;  %v95_v6 = vpop.f32.mrf.mxu0  ;;  %v160_v7 = vpop.f32.mrf.mxu1 }
  0xa9   :  { %v161_v8 = vadd.f32 %v160_v7, %v95_v6 }
  0xab   :  { %207 = vst.msk [vmem:[%s531_s2 + $0x8] sm:$0xff] %vm205_vm0, %v161_v8 }
  0xac   :  { %v119_v9 = vpop.f32.mrf.mxu2 }
  0xad   :  { %v184_v10 = vpop.f32.mrf.mxu3 }
  0xae   :  { %v185_v11 = vadd.f32 %v184_v10, %v119_v9 }
  0xb0   :  { %215 = vst.msk [vmem:[%s531_s2 + $0x48] sm:$0xff] %vm205_vm0, %v185_v11  ;;  %v98_v12 = vpop.f32.mrf.mxu0  ;;  %v163_v13 = vpop.f32.mrf.mxu1 }
  0xb1   :  { %v164_v14 = vadd.f32 %v163_v13, %v98_v12 }
  0xb3   :  { %208 = vst.msk [vmem:[%s531_s2 + $0x10] sm:$0xff] %vm205_vm0, %v164_v14 }
  0xb4   :  { %v122_v15 = vpop.f32.mrf.mxu2 }
  0xb5   :  { %v187_v16 = vpop.f32.mrf.mxu3 }
  0xb6   :  { %v188_v17 = vadd.f32 %v187_v16, %v122_v15 }
  0xb8   :  { %216 = vst.msk [vmem:[%s531_s2 + $0x50] sm:$0xff] %vm205_vm0, %v188_v17  ;;  %v101_v18 = vpop.f32.mrf.mxu0  ;;  %v166_v19 = vpop.f32.mrf.mxu1 }
  0xb9   :  { %v167_v20 = vadd.f32 %v166_v19, %v101_v18 }
  0xbb   :  { %209 = vst.msk [vmem:[%s531_s2 + $0x18] sm:$0xff] %vm205_vm0, %v167_v20 }
  0xbc   :  { %v125_v21 = vpop.f32.mrf.mxu2 }
  0xbd   :  { %v190_v22 = vpop.f32.mrf.mxu3 }
  0xbe   :  { %v191_v23 = vadd.f32 %v190_v22, %v125_v21 }
  0xc0   :  { %217 = vst.msk [vmem:[%s531_s2 + $0x58] sm:$0xff] %vm205_vm0, %v191_v23  ;;  %v104_v24 = vpop.f32.mrf.mxu0  ;;  %v169_v25 = vpop.f32.mrf.mxu1 }
  0xc1   :  { %v170_v26 = vadd.f32 %v169_v25, %v104_v24 }
  0xc3   :  { %210 = vst.msk [vmem:[%s531_s2 + $0x20] sm:$0xff] %vm205_vm0, %v170_v26 }
  0xc4   :  { %v128_v27 = vpop.f32.mrf.mxu2 }
  0xc5   :  { %v193_v28 = vpop.f32.mrf.mxu3 }
  0xc6   :  { %v194_v29 = vadd.f32 %v193_v28, %v128_v27 }
  0xc8   :  { %218 = vst.msk [vmem:[%s531_s2 + $0x60] sm:$0xff] %vm205_vm0, %v194_v29  ;;  %v107_v30 = vpop.f32.mrf.mxu0  ;;  %v172_v31 = vpop.f32.mrf.mxu1 }
  0xc9   :  { %v173_v32 = vadd.f32 %v172_v31, %v107_v30 }
  0xcb   :  { %211 = vst.msk [vmem:[%s531_s2 + $0x28] sm:$0xff] %vm205_vm0, %v173_v32 }
  0xcc   :  { %v131_v33 = vpop.f32.mrf.mxu2 }
  0xcd   :  { %v196_v34 = vpop.f32.mrf.mxu3 }
  0xce   :  { %v197_v35 = vadd.f32 %v196_v34, %v131_v33 }
  0xd0   :  { %219 = vst.msk [vmem:[%s531_s2 + $0x68] sm:$0xff] %vm205_vm0, %v197_v35  ;;  %v110_v36 = vpop.f32.mrf.mxu0  ;;  %v175_v37 = vpop.f32.mrf.mxu1 }
  0xd1   :  { %v176_v38 = vadd.f32 %v175_v37, %v110_v36 }
  0xd3   :  { %212 = vst.msk [vmem:[%s531_s2 + $0x30] sm:$0xff] %vm205_vm0, %v176_v38 }
  0xd4   :  { %v134_v39 = vpop.f32.mrf.mxu2 }
  0xd5   :  { %v199_v40 = vpop.f32.mrf.mxu3 }
  0xd6   :  { %v200_v41 = vadd.f32 %v199_v40, %v134_v39 }
  0xd8   :  { %220 = vst.msk [vmem:[%s531_s2 + $0x70] sm:$0xff] %vm205_vm0, %v200_v41  ;;  %v113_v42 = vpop.f32.mrf.mxu0  ;;  %v178_v43 = vpop.f32.mrf.mxu1 }
  0xd9   :  { %v179_v44 = vadd.f32 %v178_v43, %v113_v42 }
  0xdb   :  { %213 = vst.msk [vmem:[%s531_s2 + $0x38] sm:$0xff] %vm205_vm0, %v179_v44 }
  0xdc   :  { %v137_v45 = vpop.f32.mrf.mxu2 }
  0xdd   :  { %v202_v46 = vpop.f32.mrf.mxu3 }
  0xde   :  { %v203_v47 = vadd.f32 %v202_v46, %v137_v45 }
  0xe0   :  { %221 = vst.msk [vmem:[%s531_s2 + $0x78] sm:$0xff] %vm205_vm0, %v203_v47 }

</bundles_post_ra>
